<compile_context>
chip_gen: v7x
topology: tpu7x:2x2x1
jax: 0.10.0
libtpu: 0.0.40
codegen_flags: <defaults>
</compile_context>

<pallas_src>
import functools

import jax
import jax.numpy as jnp
from jax.experimental import pallas as pl
from jax.experimental.pallas import tpu as pltpu


def _conv_bn_relu_kernel(x_ref, w_ref, shift_ref, o_ref):
    # x_ref:     (Bt, C_in, L_pad)   input tile, L on the lane axis
    # w_ref:     (C_out, K*C_in)     BN-scale-folded weights, column = k*C_in + c
    # shift_ref: (C_out, 1)          fused conv-bias + BN shift (f32)
    # o_ref:     (Bt, C_out, L_out)  lane-dense (L_out is a multiple of 128)
    c_in = x_ref.shape[1]
    c_out, kc = w_ref.shape
    k_taps = kc // c_in
    l_out = o_ref.shape[2]

    x = x_ref[...]                                   # (Bt, C_in, L_pad)
    w = w_ref[...]                                   # (C_out, K*C_in)

    # Initialize the accumulator with the fused shift -> saves one full-tile add.
    acc = jnp.broadcast_to(shift_ref[...][None, :, :], o_ref.shape)
    acc = acc.astype(jnp.float32)

    # valid conv, stride 1: out[b,o,l] = shift[o] + sum_{k,c} w[o, k*C_in+c] * x[b, c, l+k]
    # Fully unrolled broadcast-FMAs on the VPU (K*C_in = 12 static terms).
    # If compute dtype is bf16, products are bf16 and accumulate into f32.
    for k in range(k_taps):
        xs = x[:, :, k:k + l_out]                    # lane-shifted view (Bt, C_in, L_out)
        for c in range(c_in):
            w_col = w[:, k * c_in + c]               # (C_out,) per-output-channel weights
            acc = acc + w_col[None, :, None] * xs[:, c:c + 1, :]

    o_ref[...] = jnp.maximum(acc, 0.0).astype(o_ref.dtype)


def _round_up(x, m):
    return ((x + m - 1) // m) * m


def _plan_tiling(n, c_in, c_out, l_pad, l_out_pad, itemsize):
    """Batch tile from the padded, double-buffered VMEM footprint of the input
    and output blocks (plus an f32 accumulator); keep >= 8 grid steps when the
    batch allows it.  Returns (b_tile, vmem_limit_bytes)."""
    per_elem = (_round_up(c_in, 8) * _round_up(l_pad, 128) * itemsize      # input block
                + _round_up(c_out, 8) * l_out_pad * itemsize               # output block
                + _round_up(c_out, 8) * l_out_pad * 4)                     # f32 accumulator
    budget = 10 * 1024 * 1024          # double-buffered block budget; fits every TPU gen
    bt_vmem = max(1, budget // (2 * per_elem))
    bt_grid = max(1, -(-n // 8))       # cdiv(n, 8): target >= ~8 grid steps
    b_tile = max(1, min(bt_vmem, bt_grid, n))

    const_bytes = (_round_up(c_out, 8) * 128 * itemsize       # weights (lane-padded)
                   + _round_up(c_out, 8) * 128 * 4)           # shift
    vmem_limit = 2 * (2 * per_elem * b_tile) + const_bytes + (2 << 20)
    vmem_limit = int(min(32 << 20, max(8 << 20, vmem_limit)))
    return b_tile, vmem_limit


@functools.partial(jax.jit, static_argnames=("eps", "compute_dtype"))
def conv_pass_2_forward(x_ncl, conv_w, conv_b, bn_gamma, bn_beta,
                        bn_mean, bn_var, eps=1e-5, compute_dtype=jnp.float32):
    """x_ncl: (N, C_in, L), PyTorch Conv1d layout. Returns (N, C_out, L - K + 1)."""
    n, c_in, length = x_ncl.shape
    c_out, _, k_taps = conv_w.shape
    l_out = length - (k_taps - 1)               # stride=1, padding=0
    l_out_pad = _round_up(l_out, 128)           # lane-dense output stores
    l_pad = l_out_pad + (k_taps - 1)
    itemsize = jnp.dtype(compute_dtype).itemsize

    # ---- wrapper glue: fold BN (inference) into conv weights / bias ----
    scale = bn_gamma / jnp.sqrt(bn_var + eps)                      # (C_out,)
    w_folded = conv_w * scale[:, None, None]                       # (C_out, C_in, K)
    # compact layout: w2d[o, k*C_in + c] = w_folded[o, c, k]
    w2d = jnp.transpose(w_folded, (0, 2, 1)).reshape(c_out, k_taps * c_in)
    w2d = w2d.astype(compute_dtype)
    shift = ((conv_b - bn_mean) * scale + bn_beta).reshape(c_out, 1)
    shift = shift.astype(jnp.float32)

    b_tile, vmem_limit = _plan_tiling(n, c_in, c_out, l_pad, l_out_pad, itemsize)
    n_pad = pl.cdiv(n, b_tile) * b_tile
    grid = (n_pad // b_tile,)

    # zero-pad batch (cdiv grid) and length (lane-dense output); stripped below.
    x_pad = jnp.pad(x_ncl.astype(compute_dtype),
                    ((0, n_pad - n), (0, 0), (0, l_pad - length)))

    flops = 2 * n * l_out * k_taps * c_in * c_out
    bytes_accessed = (n_pad * c_in * l_pad * itemsize
                      + c_out * k_taps * c_in * itemsize + c_out * 4
                      + n_pad * c_out * l_out_pad * itemsize)

    out = pl.pallas_call(
        _conv_bn_relu_kernel,
        out_shape=jax.ShapeDtypeStruct((n_pad, c_out, l_out_pad), compute_dtype),
        grid=grid,
        in_specs=[
            pl.BlockSpec((b_tile, c_in, l_pad), lambda b: (b, 0, 0)),
            pl.BlockSpec((c_out, k_taps * c_in), lambda b: (0, 0)),
            pl.BlockSpec((c_out, 1), lambda b: (0, 0)),
        ],
        out_specs=pl.BlockSpec((b_tile, c_out, l_out_pad), lambda b: (b, 0, 0)),
        compiler_params=pltpu.CompilerParams(
            dimension_semantics=("parallel",),
            vmem_limit_bytes=vmem_limit),
        cost_estimate=pl.CostEstimate(
            flops=flops, transcendentals=0, bytes_accessed=bytes_accessed),
    )(x_pad, w2d, shift)

    # strip batch / lane padding -> PyTorch (N, C_out, L_out) layout
    return out[:n, :, :l_out]


def _reference(x_ncl, conv_w, conv_b, bn_gamma, bn_beta, bn_mean, bn_var,
               eps=1e-5):
    """Pure-JAX reference of the PyTorch forward (inference-mode BN)."""
    y = jax.lax.conv_general_dilated(
        x_ncl, conv_w, window_strides=(1,), padding="VALID",
        dimension_numbers=("NCH", "OIH", "NCH"))
    y = y + conv_b[None, :, None]
    y = (y - bn_mean[None, :, None]) / jnp.sqrt(bn_var[None, :, None] + eps)
    y = y * bn_gamma[None, :, None] + bn_beta[None, :, None]
    return jnp.maximum(y, 0.0)


if __name__ == "__main__":
    # Small shapes consistent with the module: in_feature=4, n_feature_maps=20.
    N, C_IN, L, C_OUT = 2, 4, 16, 20

    key = jax.random.PRNGKey(0)
    kx, kw, kb, kg, kbe, km, kv = jax.random.split(key, 7)

    x = jax.random.normal(kx, (N, C_IN, L), dtype=jnp.float32)
    conv_w = 0.1 * jax.random.normal(kw, (C_OUT, C_IN, 3), dtype=jnp.float32)
    conv_b = 0.1 * jax.random.normal(kb, (C_OUT,), dtype=jnp.float32)
    bn_gamma = 1.0 + 0.1 * jax.random.normal(kg, (C_OUT,), dtype=jnp.float32)
    bn_beta = 0.1 * jax.random.normal(kbe, (C_OUT,), dtype=jnp.float32)
    bn_mean = 0.1 * jax.random.normal(km, (C_OUT,), dtype=jnp.float32)
    bn_var = jnp.abs(1.0 + 0.1 * jax.random.normal(kv, (C_OUT,),
                                                   dtype=jnp.float32))

    out = conv_pass_2_forward(x, conv_w, conv_b, bn_gamma, bn_beta,
                              bn_mean, bn_var)
    out = jax.block_until_ready(out)

    ref = _reference(x, conv_w, conv_b, bn_gamma, bn_beta, bn_mean, bn_var)
    assert out.shape == (N, C_OUT, L - 2), out.shape
    err = float(jnp.max(jnp.abs(out - ref)))
    assert err < 1e-4, err

    print("KERNEL_OK")
</pallas_src>

<mosaic_0001>
module attributes {stable_mosaic.version = 11 : i64} {
  func.func @_conv_bn_relu_kernel(%arg0: i32, %arg1: memref<1x4x130xf32, #tpu.memory_space<vmem>>, %arg2: memref<20x12xf32, #tpu.memory_space<vmem>>, %arg3: memref<20x1xf32, #tpu.memory_space<vmem>>, %arg4: memref<1x20x128xf32, #tpu.memory_space<vmem>>) attributes {dimension_semantics = [#tpu.dimension_semantics<parallel>], iteration_bounds = array<i64: 2>, scalar_prefetch = 0 : i64, scratch_operands = 0 : i64, tpu.core_type = #tpu.core_type<tc>, window_params = [{transform_indices = @transform_0, window_bounds = array<i64: 1, 4, 130>}, {pipeline_mode = #tpu.pipeline_mode<synchronous>, transform_indices = @transform_1, window_bounds = array<i64: 20, 12>}, {pipeline_mode = #tpu.pipeline_mode<synchronous>, transform_indices = @transform_2, window_bounds = array<i64: 20, 1>}, {transform_indices = @transform_3, window_bounds = array<i64: 1, 20, 128>}]} {
    %c0 = arith.constant 0 : index
    %c0_0 = arith.constant 0 : index
    %c0_1 = arith.constant 0 : index
    %0 = vector.load %arg1[%c0, %c0_0, %c0_1] : memref<1x4x130xf32, #tpu.memory_space<vmem>>, vector<1x4x130xf32>
    %c0_2 = arith.constant 0 : index
    %c0_3 = arith.constant 0 : index
    %1 = vector.load %arg2[%c0_2, %c0_3] : memref<20x12xf32, #tpu.memory_space<vmem>>, vector<20x12xf32>
    %c0_4 = arith.constant 0 : index
    %c0_5 = arith.constant 0 : index
    %2 = vector.load %arg3[%c0_4, %c0_5] : memref<20x1xf32, #tpu.memory_space<vmem>>, vector<20x1xf32>
    %3 = vector.shape_cast %2 : vector<20x1xf32> to vector<1x20x1xf32>
    %4 = vector.shape_cast %3 : vector<1x20x1xf32> to vector<1x20x1xf32>
    %5 = vector.broadcast %4 : vector<1x20x1xf32> to vector<1x20x128xf32>
    %6 = vector.extract_strided_slice %0 {offsets = [0, 0, 0], sizes = [1, 4, 128], strides = [1, 1, 1]} : vector<1x4x130xf32> to vector<1x4x128xf32>
    %7 = vector.extract_strided_slice %1 {offsets = [0, 0], sizes = [20, 1], strides = [1, 1]} : vector<20x12xf32> to vector<20x1xf32>
    %8 = vector.shape_cast %7 : vector<20x1xf32> to vector<20xf32>
    %9 = vector.shape_cast %8 : vector<20xf32> to vector<1x20x1xf32>
    %10 = vector.extract_strided_slice %6 {offsets = [0, 0, 0], sizes = [1, 1, 128], strides = [1, 1, 1]} : vector<1x4x128xf32> to vector<1x1x128xf32>
    %11 = vector.broadcast %9 : vector<1x20x1xf32> to vector<1x20x128xf32>
    %12 = vector.broadcast %10 : vector<1x1x128xf32> to vector<1x20x128xf32>
    %13 = arith.mulf %11, %12 : vector<1x20x128xf32>
    %14 = arith.addf %5, %13 : vector<1x20x128xf32>
    %15 = vector.extract_strided_slice %1 {offsets = [0, 1], sizes = [20, 1], strides = [1, 1]} : vector<20x12xf32> to vector<20x1xf32>
    %16 = vector.shape_cast %15 : vector<20x1xf32> to vector<20xf32>
    %17 = vector.shape_cast %16 : vector<20xf32> to vector<1x20x1xf32>
    %18 = vector.extract_strided_slice %6 {offsets = [0, 1, 0], sizes = [1, 1, 128], strides = [1, 1, 1]} : vector<1x4x128xf32> to vector<1x1x128xf32>
    %19 = vector.broadcast %17 : vector<1x20x1xf32> to vector<1x20x128xf32>
    %20 = vector.broadcast %18 : vector<1x1x128xf32> to vector<1x20x128xf32>
    %21 = arith.mulf %19, %20 : vector<1x20x128xf32>
    %22 = arith.addf %14, %21 : vector<1x20x128xf32>
    %23 = vector.extract_strided_slice %1 {offsets = [0, 2], sizes = [20, 1], strides = [1, 1]} : vector<20x12xf32> to vector<20x1xf32>
    %24 = vector.shape_cast %23 : vector<20x1xf32> to vector<20xf32>
    %25 = vector.shape_cast %24 : vector<20xf32> to vector<1x20x1xf32>
    %26 = vector.extract_strided_slice %6 {offsets = [0, 2, 0], sizes = [1, 1, 128], strides = [1, 1, 1]} : vector<1x4x128xf32> to vector<1x1x128xf32>
    %27 = vector.broadcast %25 : vector<1x20x1xf32> to vector<1x20x128xf32>
    %28 = vector.broadcast %26 : vector<1x1x128xf32> to vector<1x20x128xf32>
    %29 = arith.mulf %27, %28 : vector<1x20x128xf32>
    %30 = arith.addf %22, %29 : vector<1x20x128xf32>
    %31 = vector.extract_strided_slice %1 {offsets = [0, 3], sizes = [20, 1], strides = [1, 1]} : vector<20x12xf32> to vector<20x1xf32>
    %32 = vector.shape_cast %31 : vector<20x1xf32> to vector<20xf32>
    %33 = vector.shape_cast %32 : vector<20xf32> to vector<1x20x1xf32>
    %34 = vector.extract_strided_slice %6 {offsets = [0, 3, 0], sizes = [1, 1, 128], strides = [1, 1, 1]} : vector<1x4x128xf32> to vector<1x1x128xf32>
    %35 = vector.broadcast %33 : vector<1x20x1xf32> to vector<1x20x128xf32>
    %36 = vector.broadcast %34 : vector<1x1x128xf32> to vector<1x20x128xf32>
    %37 = arith.mulf %35, %36 : vector<1x20x128xf32>
    %38 = arith.addf %30, %37 : vector<1x20x128xf32>
    %39 = vector.extract_strided_slice %0 {offsets = [0, 0, 1], sizes = [1, 4, 128], strides = [1, 1, 1]} : vector<1x4x130xf32> to vector<1x4x128xf32>
    %40 = vector.extract_strided_slice %1 {offsets = [0, 4], sizes = [20, 1], strides = [1, 1]} : vector<20x12xf32> to vector<20x1xf32>
    %41 = vector.shape_cast %40 : vector<20x1xf32> to vector<20xf32>
    %42 = vector.shape_cast %41 : vector<20xf32> to vector<1x20x1xf32>
    %43 = vector.extract_strided_slice %39 {offsets = [0, 0, 0], sizes = [1, 1, 128], strides = [1, 1, 1]} : vector<1x4x128xf32> to vector<1x1x128xf32>
    %44 = vector.broadcast %42 : vector<1x20x1xf32> to vector<1x20x128xf32>
    %45 = vector.broadcast %43 : vector<1x1x128xf32> to vector<1x20x128xf32>
    %46 = arith.mulf %44, %45 : vector<1x20x128xf32>
    %47 = arith.addf %38, %46 : vector<1x20x128xf32>
    %48 = vector.extract_strided_slice %1 {offsets = [0, 5], sizes = [20, 1], strides = [1, 1]} : vector<20x12xf32> to vector<20x1xf32>
    %49 = vector.shape_cast %48 : vector<20x1xf32> to vector<20xf32>
    %50 = vector.shape_cast %49 : vector<20xf32> to vector<1x20x1xf32>
    %51 = vector.extract_strided_slice %39 {offsets = [0, 1, 0], sizes = [1, 1, 128], strides = [1, 1, 1]} : vector<1x4x128xf32> to vector<1x1x128xf32>
    %52 = vector.broadcast %50 : vector<1x20x1xf32> to vector<1x20x128xf32>
    %53 = vector.broadcast %51 : vector<1x1x128xf32> to vector<1x20x128xf32>
    %54 = arith.mulf %52, %53 : vector<1x20x128xf32>
    %55 = arith.addf %47, %54 : vector<1x20x128xf32>
    %56 = vector.extract_strided_slice %1 {offsets = [0, 6], sizes = [20, 1], strides = [1, 1]} : vector<20x12xf32> to vector<20x1xf32>
    %57 = vector.shape_cast %56 : vector<20x1xf32> to vector<20xf32>
    %58 = vector.shape_cast %57 : vector<20xf32> to vector<1x20x1xf32>
    %59 = vector.extract_strided_slice %39 {offsets = [0, 2, 0], sizes = [1, 1, 128], strides = [1, 1, 1]} : vector<1x4x128xf32> to vector<1x1x128xf32>
    %60 = vector.broadcast %58 : vector<1x20x1xf32> to vector<1x20x128xf32>
    %61 = vector.broadcast %59 : vector<1x1x128xf32> to vector<1x20x128xf32>
    %62 = arith.mulf %60, %61 : vector<1x20x128xf32>
    %63 = arith.addf %55, %62 : vector<1x20x128xf32>
    %64 = vector.extract_strided_slice %1 {offsets = [0, 7], sizes = [20, 1], strides = [1, 1]} : vector<20x12xf32> to vector<20x1xf32>
    %65 = vector.shape_cast %64 : vector<20x1xf32> to vector<20xf32>
    %66 = vector.shape_cast %65 : vector<20xf32> to vector<1x20x1xf32>
    %67 = vector.extract_strided_slice %39 {offsets = [0, 3, 0], sizes = [1, 1, 128], strides = [1, 1, 1]} : vector<1x4x128xf32> to vector<1x1x128xf32>
    %68 = vector.broadcast %66 : vector<1x20x1xf32> to vector<1x20x128xf32>
    %69 = vector.broadcast %67 : vector<1x1x128xf32> to vector<1x20x128xf32>
    %70 = arith.mulf %68, %69 : vector<1x20x128xf32>
    %71 = arith.addf %63, %70 : vector<1x20x128xf32>
    %72 = vector.extract_strided_slice %0 {offsets = [0, 0, 2], sizes = [1, 4, 128], strides = [1, 1, 1]} : vector<1x4x130xf32> to vector<1x4x128xf32>
    %73 = vector.extract_strided_slice %1 {offsets = [0, 8], sizes = [20, 1], strides = [1, 1]} : vector<20x12xf32> to vector<20x1xf32>
    %74 = vector.shape_cast %73 : vector<20x1xf32> to vector<20xf32>
    %75 = vector.shape_cast %74 : vector<20xf32> to vector<1x20x1xf32>
    %76 = vector.extract_strided_slice %72 {offsets = [0, 0, 0], sizes = [1, 1, 128], strides = [1, 1, 1]} : vector<1x4x128xf32> to vector<1x1x128xf32>
    %77 = vector.broadcast %75 : vector<1x20x1xf32> to vector<1x20x128xf32>
    %78 = vector.broadcast %76 : vector<1x1x128xf32> to vector<1x20x128xf32>
    %79 = arith.mulf %77, %78 : vector<1x20x128xf32>
    %80 = arith.addf %71, %79 : vector<1x20x128xf32>
    %81 = vector.extract_strided_slice %1 {offsets = [0, 9], sizes = [20, 1], strides = [1, 1]} : vector<20x12xf32> to vector<20x1xf32>
    %82 = vector.shape_cast %81 : vector<20x1xf32> to vector<20xf32>
    %83 = vector.shape_cast %82 : vector<20xf32> to vector<1x20x1xf32>
    %84 = vector.extract_strided_slice %72 {offsets = [0, 1, 0], sizes = [1, 1, 128], strides = [1, 1, 1]} : vector<1x4x128xf32> to vector<1x1x128xf32>
    %85 = vector.broadcast %83 : vector<1x20x1xf32> to vector<1x20x128xf32>
    %86 = vector.broadcast %84 : vector<1x1x128xf32> to vector<1x20x128xf32>
    %87 = arith.mulf %85, %86 : vector<1x20x128xf32>
    %88 = arith.addf %80, %87 : vector<1x20x128xf32>
    %89 = vector.extract_strided_slice %1 {offsets = [0, 10], sizes = [20, 1], strides = [1, 1]} : vector<20x12xf32> to vector<20x1xf32>
    %90 = vector.shape_cast %89 : vector<20x1xf32> to vector<20xf32>
    %91 = vector.shape_cast %90 : vector<20xf32> to vector<1x20x1xf32>
    %92 = vector.extract_strided_slice %72 {offsets = [0, 2, 0], sizes = [1, 1, 128], strides = [1, 1, 1]} : vector<1x4x128xf32> to vector<1x1x128xf32>
    %93 = vector.broadcast %91 : vector<1x20x1xf32> to vector<1x20x128xf32>
    %94 = vector.broadcast %92 : vector<1x1x128xf32> to vector<1x20x128xf32>
    %95 = arith.mulf %93, %94 : vector<1x20x128xf32>
    %96 = arith.addf %88, %95 : vector<1x20x128xf32>
    %97 = vector.extract_strided_slice %1 {offsets = [0, 11], sizes = [20, 1], strides = [1, 1]} : vector<20x12xf32> to vector<20x1xf32>
    %98 = vector.shape_cast %97 : vector<20x1xf32> to vector<20xf32>
    %99 = vector.shape_cast %98 : vector<20xf32> to vector<1x20x1xf32>
    %100 = vector.extract_strided_slice %72 {offsets = [0, 3, 0], sizes = [1, 1, 128], strides = [1, 1, 1]} : vector<1x4x128xf32> to vector<1x1x128xf32>
    %101 = vector.broadcast %99 : vector<1x20x1xf32> to vector<1x20x128xf32>
    %102 = vector.broadcast %100 : vector<1x1x128xf32> to vector<1x20x128xf32>
    %103 = arith.mulf %101, %102 : vector<1x20x128xf32>
    %104 = arith.addf %96, %103 : vector<1x20x128xf32>
    %cst = arith.constant 0.000000e+00 : f32
    %105 = vector.broadcast %cst : f32 to vector<1x20x128xf32>
    %106 = arith.maximumf %104, %105 : vector<1x20x128xf32>
    %c0_6 = arith.constant 0 : index
    %c0_7 = arith.constant 0 : index
    %c0_8 = arith.constant 0 : index
    %107 = vector.load %arg4[%c0_6, %c0_7, %c0_8] : memref<1x20x128xf32, #tpu.memory_space<vmem>>, vector<1x20x128xf32>
    tpu.vector_store %arg4[%c0_6, %c0_7, %c0_8], %106 {strides = array<i32>} : memref<1x20x128xf32, #tpu.memory_space<vmem>>, vector<1x20x128xf32>,
    return
  }
  func.func @transform_0(%arg0: i32) -> (i32, i32, i32) {
    %c0_i32 = arith.constant 0 : i32
    %c0_i32_0 = arith.constant 0 : i32
    %c0_i32_1 = arith.constant 0 : i32
    return %arg0, %c0_i32, %c0_i32_0 : i32, i32, i32
  }
  func.func @transform_1(%arg0: i32) -> (i32, i32) {
    %c0_i32 = arith.constant 0 : i32
    %c0_i32_0 = arith.constant 0 : i32
    %c0_i32_1 = arith.constant 0 : i32
    return %c0_i32, %c0_i32_0 : i32, i32
  }
  func.func @transform_2(%arg0: i32) -> (i32, i32) {
    %c0_i32 = arith.constant 0 : i32
    %c0_i32_0 = arith.constant 0 : i32
    %c0_i32_1 = arith.constant 0 : i32
    return %c0_i32, %c0_i32_0 : i32, i32
  }
  func.func @transform_3(%arg0: i32) -> (i32, i32, i32) {
    %c0_i32 = arith.constant 0 : i32
    %c0_i32_0 = arith.constant 0 : i32
    %c0_i32_1 = arith.constant 0 : i32
    return %arg0, %c0_i32, %c0_i32_0 : i32, i32, i32
  }
}

</mosaic_0001>

<bundles_post_ra>
// kernel: conv_pass_2_forward.1
= control target key start
LH: loop header
LB: loop body
LE: loop exit
PB: predicated region body
PF: predicated region fallthrough
CT: control target
= control target key end

     0   :  { %s880_s12 = smov 0   ;;  %s1132_s0 = inlined_call_operand.vmem [shape: f32[2,4,130], index: 0, kind: input, shape index: {}]   ;;  %s1133_s1 = inlined_call_operand.vmem [shape: f32[20,12], index: 1, kind: input, shape index: {}]   ;;  %s1134_s2 = inlined_call_operand.vmem [shape: f32[20,1], index: 2, kind: input, shape index: {}]   ;;  %s1135_s3 = inlined_call_operand.vmem [shape: f32[2,20,128], index: 3, kind: output, shape index: {}]  }
   0x1 LB: > { %s780_s13 = sadd.s32 4294967295, %s844_s12   ;;  %p784_p0 = scmp.ge.s32.totalorder %s844_s12, 1  ;;  %s844_s12 = sphi %s880_s12, %s13_s12  }
   0x2   : > { %p137_p1 = scmp.lt.s32.totalorder %s844_s12, 3 }
   0x4   : > { %p138_p2 = pnand %p784_p0, %p137_p1 }
   0x5   : > { %v177_v0 = vld [vmem:[%s1134_s2 + $0x10] sm:$0xf] (!%p138_p2)  ;;  %v175_v1 = vld [vmem:[%s1134_s2] sm:$0xff] (!%p138_p2)  ;;  %v846_v2 = vmov (!%p138_p2), 0   ;;  %v176_v3 = vld [vmem:[%s1134_s2 + $0x8] sm:$0xff] (!%p138_p2)  ;;  %v847_v7 = vmov (!%p138_p2), 1   ;;  %v208_v18 = vlaneseq (!%p138_p2) }
   0x6   : > { %141 = sbr.rel (%p138_p2) target bundleno = 386 (0x182), region = 32  ;;  %815 = vset.pattern.permute.xlu1 (!%p138_p2), %v846_v2  ;;  %814 = vset.pattern.permute.xlu0 (!%p138_p2), %v846_v2  ;;  %v172_v4 = vld [vmem:[%s1133_s1] sm:$0xff] (!%p138_p2)  ;;  %v903_v5 = vld [vmem:[%s1133_s1 + $0x8] sm:$0xff] (!%p138_p2)  ;;  %v908_v6 = vld [vmem:[%s1133_s1 + $0x10] sm:$0xf] (!%p138_p2)  ;;  %v848_v8 = vmov (!%p138_p2), 2  }
   0x7   : > { %190 = vperm.xlu1 (!%p138_p2), %815, %v177_v0   ;;  %180 = vperm.xlu0 (!%p138_p2), %814, %v175_v1   ;;  %v849_v9 = vmov (!%p138_p2), 3   ;;  %v850_v10 = vmov (!%p138_p2), 4   ;;  %v851_v11 = vmov (!%p138_p2), 5   ;;  %v852_v12 = vmov (!%p138_p2), 6   ;;  %p161_p3 = scmp.lt.s32.totalorder (!%p138_p2), %s780_s13, 1  ;;  %s858_s30 = smov (!%p138_p2), 127  }
   0x8   : > { %v853_v13 = vmov (!%p138_p2), 7   ;;  %v854_v14 = vmov (!%p138_p2), 8   ;;  %v855_v15 = vmov (!%p138_p2), 9   ;;  %v856_v16 = vmov (!%p138_p2), 10   ;;  %s859_s4 = smov (!%p138_p2), 126  }
   0x9   : > { %v857_v17 = vmov (!%p138_p2), 11   ;;  %v941_v19 = vshrl.u32 (!%p138_p2), %v208_v18, 7  ;;  %vm339_vm0 = vcmask (!%p138_p2), 1039360   ;;  %vm574_vm1 = vcmask (!%p138_p2), 1031168  }
   0xb   : > { %185 = vperm.xlu0 (!%p138_p2), %814, %v176_v3   ;;  %195 = vperm.xlu1 (!%p138_p2), %815, %v172_v4   ;;  %v210_v20 = vsub.s32 (!%p138_p2), 0, %v941_v19  ;;  %v232_v28 = vsub.s32 (!%p138_p2), 1, %v941_v19  ;;  %v953_v37 = vsub.s32 (!%p138_p2), 2, %v941_v19  ;;  %v958_v45 = vsub.s32 (!%p138_p2), 3, %v941_v19 }
   0xc   : > { %v303_v46 = vsub.s32 (!%p138_p2), 4, %v941_v19 }
   0xd   : > { %s1137_s13 = smov (!%p161_p3, %s780_s13), 1 }
   0xe   : > { %s790_s26 = sshll.u32 %s1137_s13, 3  ;;  %s791_s5 = smul.u32 24, %s1137_s13 }
   0xf   : > { %200 = vperm.xlu0 %814, %v903_v5   ;;  %205 = vperm.xlu1 %815, %v908_v6   ;;  %s165_s29 = scalar_lea.vmem %s1132_s0, %s790_s26 }
  0x10   : > { %v947_v21 = vld [vmem:[%s165_s29] sm:$0xff]  ;;  %s170_s8 = scalar_lea.vmem %s1135_s3, %s791_s5 }
  0x11   : > { %v211_v24 = vrot.slane %v947_v21, %v210_v20  ;;  %v233_v34 = vrot.slane %v947_v21, %v232_v28  ;;  %v255_v42 = vrot.slane %v947_v21, %v953_v37  ;;  %v963_v52 = vrot.slane %v947_v21, %v958_v45 }
  0x12   : > { %v304_v53 = vrot.slane %v947_v21, %v303_v46 }
  0x13   : > { %816 = vset.pattern.permute.xlu0 %v847_v7  ;;  %817 = vset.pattern.permute.xlu1 %v847_v7  ;;  %v967_v59 = vrot.slane %v211_v24, %v210_v20 }
  0x14   : > { %219 = vperm.xlu0 %816, %v172_v4   ;;  %223 = vperm.xlu1 %817, %v903_v5   ;;  %v969_v60 = vrot.slane %v304_v53, %v210_v20 }
  0x18   : > { %818 = vset.pattern.permute.xlu0 %v848_v8  ;;  %227 = vperm.xlu1 %817, %v908_v6  }
  0x19   : > { %241 = vperm.xlu0 %818, %v172_v4  }
  0x1c   : > { %819 = vset.pattern.permute.xlu1 %v848_v8  ;;  %v367_v8 = vsub.s32 5, %v941_v19 }
  0x1d   : > { %820 = vset.pattern.permute.xlu0 %v849_v9  ;;  %245 = vperm.xlu1 %819, %v903_v5  }
  0x1e   : > { %263 = vperm.xlu0 %820, %v172_v4  }
  0x21   : > { %249 = vperm.xlu1 %819, %v908_v6  }
  0x22   : > { %822 = vset.pattern.permute.xlu0 %v850_v10 }
  0x23   : > { %285 = vperm.xlu0 %822, %v172_v4  }
  0x25   : > { %821 = vset.pattern.permute.xlu1 %v849_v9 }
  0x26   : > { %267 = vperm.xlu1 %821, %v903_v5  }
  0x27   : > { %824 = vset.pattern.permute.xlu0 %v851_v11 }
  0x28   : > { %350 = vperm.xlu0 %824, %v172_v4  }
  0x2a   : > { %271 = vperm.xlu1 %821, %v908_v6  }
  0x2c   : > { %826 = vset.pattern.permute.xlu0 %v852_v12 }
  0x2d   : > { %413 = vperm.xlu0 %826, %v172_v4  }
  0x2e   : > { %823 = vset.pattern.permute.xlu1 %v850_v10 }
  0x2f   : > { %289 = vperm.xlu1 %823, %v903_v5  }
  0x31   : > { %828 = vset.pattern.permute.xlu0 %v853_v13 }
  0x32   : > { %476 = vperm.xlu0 %828, %v172_v4  }
  0x33   : > { %293 = vperm.xlu1 %823, %v908_v6  }
  0x36   : > { %830 = vset.pattern.permute.xlu0 %v854_v14 }
  0x37   : > { %825 = vset.pattern.permute.xlu1 %v851_v11  ;;  %539 = vperm.xlu0 %830, %v172_v4  }
  0x38   : > { %354 = vperm.xlu1 %825, %v903_v5  }
  0x3b   : > { %832 = vset.pattern.permute.xlu0 %v855_v15 }
  0x3c   : > { %358 = vperm.xlu1 %825, %v908_v6   ;;  %585 = vperm.xlu0 %832, %v172_v4  }
  0x40   : > { %827 = vset.pattern.permute.xlu1 %v852_v12  ;;  %834 = vset.pattern.permute.xlu0 %v856_v16  ;;  %v368_v12 = vrot.slane %v947_v21, %v367_v8 }
  0x41   : > { %417 = vperm.xlu1 %827, %v903_v5   ;;  %630 = vperm.xlu0 %834, %v172_v4  }
  0x45   : > { %421 = vperm.xlu1 %827, %v908_v6   ;;  %836 = vset.pattern.permute.xlu0 %v857_v17 }
  0x46   : > { %675 = vperm.xlu0 %836, %v172_v4  }
  0x49   : > { %829 = vset.pattern.permute.xlu1 %v853_v13 }
  0x4a   : > { %480 = vperm.xlu1 %829, %v903_v5  }
  0x4e   : > { %484 = vperm.xlu1 %829, %v908_v6  }
  0x52   : > { %831 = vset.pattern.permute.xlu1 %v854_v14 }
  0x53   : > { %543 = vperm.xlu1 %831, %v903_v5  }
  0x57   : > { %547 = vperm.xlu1 %831, %v908_v6  }
  0x5b   : > { %833 = vset.pattern.permute.xlu1 %v855_v15 }
  0x5c   : > { %589 = vperm.xlu1 %833, %v903_v5  }
  0x60   : > { %593 = vperm.xlu1 %833, %v908_v6  }
  0x64   : > { %835 = vset.pattern.permute.xlu1 %v856_v16  ;;  %v987_v16 = vrot.slane %v233_v34, %v232_v28 }
  0x65   : > { %634 = vperm.xlu1 %835, %v903_v5  }
  0x69   : > { %638 = vperm.xlu1 %835, %v908_v6  }
  0x6d   : > { %837 = vset.pattern.permute.xlu1 %v857_v17  ;;  %v989_v17 = vrot.slane %v368_v12, %v232_v28 }
  0x6e   : > { %679 = vperm.xlu1 %837, %v903_v5  }
  0x72   : > { %683 = vperm.xlu1 %837, %v908_v6  }
  0x86   : > { %v191_v22 = vpop.permute.xlu1 %190  ;;  %v181_v23 = vpop.permute.xlu0 %180 }
  0x8a   : > { %v186_v25 = vpop.permute.xlu0 %185  ;;  %v196_v26 = vpop.permute.xlu1 %195 }
  0x8b   : > { %v212_v27 = vmul.f32 %v211_v24, %v196_v26 }
  0x8d   : > { %v215_v29 = vadd.f32 %v212_v27, %v181_v23 }
  0x8e   : > { %v201_v30 = vpop.permute.xlu0 %200  ;;  %v206_v31 = vpop.permute.xlu1 %205 }
  0x8f   : > { %v213_v32 = vmul.f32 %v211_v24, %v201_v30  ;;  %v214_v33 = vmul.f32 %v211_v24, %v206_v31  ;;  %v430_v24 = vsub.s32 6, %v941_v19 }
  0x91   : > { %v216_v35 = vadd.f32 %v213_v32, %v186_v25  ;;  %v217_v36 = vadd.f32 %v214_v33, %v191_v22  ;;  %v431_v28 = vrot.slane %v947_v21, %v430_v24  ;;  %v1006_v32 = vrot.slane %v255_v42, %v953_v37 }
  0x93   : > { %v220_v38 = vpop.permute.xlu0 %219  ;;  %v224_v39 = vpop.permute.xlu1 %223  ;;  %v1009_v33 = vrot.slane %v431_v28, %v953_v37 }
  0x94   : > { %v234_v40 = vmul.f32 %v233_v34, %v220_v38  ;;  %v235_v41 = vmul.f32 %v233_v34, %v224_v39  ;;  %v493_v38 = vsub.s32 7, %v941_v19 }
  0x96   : > { %v237_v43 = vadd.f32 %v234_v40, %v215_v29  ;;  %v238_v44 = vadd.f32 %v235_v41, %v216_v35  ;;  %v494_v41 = vrot.slane %v947_v21, %v493_v38 }
  0x97   : > { %v228_v47 = vpop.permute.xlu1 %227 }
  0x98   : > { %v236_v48 = vmul.f32 %v233_v34, %v228_v47  ;;  %v242_v49 = vpop.permute.xlu0 %241  ;;  %v1030_v46 = vrot.slane %v494_v41, %v958_v45 }
  0x99   : > { %v256_v50 = vmul.f32 %v255_v42, %v242_v49 }
  0x9a   : > { %v239_v51 = vadd.f32 %v236_v48, %v217_v36 }
  0x9b   : > { %v259_v54 = vadd.f32 %v256_v50, %v237_v43 }
  0x9c   : > { %v246_v55 = vpop.permute.xlu1 %245 }
  0x9d   : > { %v257_v56 = vmul.f32 %v255_v42, %v246_v55  ;;  %v264_v57 = vpop.permute.xlu0 %263 }
  0x9e   : > { %v278_v58 = vmul.f32 %v963_v52, %v264_v57 }
  0x9f   : > { %v260_v61 = vadd.f32 %v257_v56, %v238_v44  ;;  %v1027_v44 = vrot.slane %v963_v52, %v958_v45 }
  0xa0   : > { %v971_v62 = vadd.f32 %v278_v58, %v259_v54  ;;  %v250_v63 = vpop.permute.xlu1 %249 }
  0xa1   : > { %v258_v0 = vmul.f32 %v255_v42, %v250_v63 }
  0xa2   : > { %v286_v1 = vpop.permute.xlu0 %285 }
  0xa3   : > { %v261_v2 = vadd.f32 %v258_v0, %v239_v51  ;;  %v315_v3 = vmul.f32 %v967_v59, %v286_v1  ;;  %v316_v4 = vmul.f32 %v969_v60, %v286_v1 }
  0xa5   : > { %v268_v5 = vpop.permute.xlu1 %267  ;;  %329 = vrot.lane.b32.xlu1 %v316_v4, %s858_s30  ;;  %327 = vrot.lane.b32.xlu0 %v315_v3, %s858_s30 }
  0xa6   : > { %v279_v6 = vmul.f32 %v963_v52, %v268_v5 }
  0xa7   : > { %v351_v20 = vpop.permute.xlu0 %350 }
  0xa8   : > { %v978_v7 = vadd.f32 %v279_v6, %v260_v61  ;;  %v379_v25 = vmul.f32 %v987_v16, %v351_v20  ;;  %v380_v26 = vmul.f32 %v989_v17, %v351_v20 }
  0xa9   : > { %v272_v9 = vpop.permute.xlu1 %271 }
  0xaa   : > { %v280_v10 = vmul.f32 %v963_v52, %v272_v9 }
  0xac   : > { %v982_v11 = vadd.f32 %v280_v10, %v261_v2  ;;  %v414_v34 = vpop.permute.xlu0 %413 }
  0xad   : > { %v442_v39 = vmul.f32 %v1006_v32, %v414_v34  ;;  %v443_v37 = vmul.f32 %v1009_v33, %v414_v34 }
  0xae   : > { %v290_v13 = vpop.permute.xlu1 %289 }
  0xaf   : > { %v317_v14 = vmul.f32 %v967_v59, %v290_v13  ;;  %v318_v15 = vmul.f32 %v969_v60, %v290_v13 }
  0xb1   : > { %333 = vrot.lane.b32.xlu1 %v318_v15, %s858_s30  ;;  %331 = vrot.lane.b32.xlu0 %v317_v14, %s858_s30  ;;  %v477_v21 = vpop.permute.xlu0 %476 }
  0xb2   : > { %v294_v18 = vpop.permute.xlu1 %293  ;;  %v505_v49 = vmul.f32 %v1027_v44, %v477_v21  ;;  %v506_v50 = vmul.f32 %v1030_v46, %v477_v21 }
  0xb3   : > { %v319_v22 = vmul.f32 %v967_v59, %v294_v18  ;;  %v320_v23 = vmul.f32 %v969_v60, %v294_v18 }
  0xb5   : > { %337 = vrot.lane.b32.xlu1 %v320_v23, %s858_s30  ;;  %335 = vrot.lane.b32.xlu0 %v319_v22, %s858_s30 }
  0xb6   : > { %v540_v54 = vpop.permute.xlu0 %539 }
  0xb7   : > { %v355_v27 = vpop.permute.xlu1 %354  ;;  %v550_v57 = vmul.f32 %v540_v54, %v967_v59  ;;  %v551_v58 = vmul.f32 %v540_v54, %v969_v60 }
  0xb8   : > { %v381_v29 = vmul.f32 %v987_v16, %v355_v27  ;;  %v382_v30 = vmul.f32 %v989_v17, %v355_v27 }
  0xb9   : > { %393 = vrot.lane.b32.xlu1 %v380_v26, %s858_s30  ;;  %391 = vrot.lane.b32.xlu0 %v379_v25, %s858_s30 }
  0xbb   : > { %v359_v31 = vpop.permute.xlu1 %358  ;;  %v586_v2 = vpop.permute.xlu0 %585 }
  0xbc   : > { %v383_v35 = vmul.f32 %v987_v16, %v359_v31  ;;  %v384_v36 = vmul.f32 %v989_v17, %v359_v31  ;;  %v596_v5 = vmul.f32 %v586_v2, %v987_v16  ;;  %v597_v6 = vmul.f32 %v586_v2, %v989_v17 }
  0xbd   : > { %397 = vrot.lane.b32.xlu1 %v382_v30, %s858_s30  ;;  %395 = vrot.lane.b32.xlu0 %v381_v29, %s858_s30 }
  0xc0   : > { %v418_v40 = vpop.permute.xlu1 %417 }
  0xc1   : > { %401 = vrot.lane.b32.xlu1 %v384_v36, %s858_s30  ;;  %399 = vrot.lane.b32.xlu0 %v383_v35, %s858_s30  ;;  %v444_v42 = vmul.f32 %v1006_v32, %v418_v40  ;;  %v445_v43 = vmul.f32 %v1009_v33, %v418_v40 }
  0xc4   : > { %v422_v19 = vpop.permute.xlu1 %421 }
  0xc5   : > { %456 = vrot.lane.b32.xlu1 %v443_v37, %s858_s30  ;;  %454 = vrot.lane.b32.xlu0 %v442_v39, %s858_s30  ;;  %v446_v47 = vmul.f32 %v1006_v32, %v422_v19  ;;  %v447_v48 = vmul.f32 %v1009_v33, %v422_v19 }
  0xc9   : > { %460 = vrot.lane.b32.xlu1 %v445_v43, %s858_s30  ;;  %458 = vrot.lane.b32.xlu0 %v444_v42, %s858_s30  ;;  %v481_v51 = vpop.permute.xlu1 %480 }
  0xca   : > { %v507_v45 = vmul.f32 %v1027_v44, %v481_v51  ;;  %v508_v52 = vmul.f32 %v1030_v46, %v481_v51 }
  0xcd   : > { %464 = vrot.lane.b32.xlu1 %v447_v48, %s858_s30  ;;  %462 = vrot.lane.b32.xlu0 %v446_v47, %s858_s30  ;;  %v485_v53 = vpop.permute.xlu1 %484 }
  0xce   : > { %v509_v55 = vmul.f32 %v1027_v44, %v485_v53  ;;  %v510_v56 = vmul.f32 %v1030_v46, %v485_v53 }
  0xd1   : > { %519 = vrot.lane.b32.xlu1 %v506_v50, %s858_s30  ;;  %517 = vrot.lane.b32.xlu0 %v505_v49, %s858_s30 }
  0xd2   : > { %v544_v61 = vpop.permute.xlu1 %543 }
  0xd3   : > { %v552_v63 = vmul.f32 %v544_v61, %v967_v59  ;;  %v553_v0 = vmul.f32 %v544_v61, %v969_v60 }
  0xd5   : > { %523 = vrot.lane.b32.xlu1 %v508_v52, %s858_s30  ;;  %521 = vrot.lane.b32.xlu0 %v507_v45, %s858_s30 }
  0xd6   : > { %v548_v1 = vpop.permute.xlu1 %547 }
  0xd7   : > { %v554_v3 = vmul.f32 %v548_v1, %v967_v59  ;;  %v555_v4 = vmul.f32 %v548_v1, %v969_v60  ;;  %v631_v60 = vpop.permute.xlu0 %630 }
  0xd8   : > { %v641_v14 = vmul.f32 %v631_v60, %v1006_v32  ;;  %v642_v15 = vmul.f32 %v631_v60, %v1009_v33 }
  0xd9   : > { %527 = vrot.lane.b32.xlu1 %v510_v56, %s858_s30  ;;  %525 = vrot.lane.b32.xlu0 %v509_v55, %s858_s30 }
  0xdb   : > { %v590_v8 = vpop.permute.xlu1 %589 }
  0xdc   : > { %v598_v9 = vmul.f32 %v590_v8, %v987_v16  ;;  %v599_v10 = vmul.f32 %v590_v8, %v989_v17 }
  0xdd   : > { %564 = vrot.lane.b32.xlu1 %v551_v58, %s859_s4  ;;  %562 = vrot.lane.b32.xlu0 %v550_v57, %s859_s4 }
  0xdf   : > { %v594_v59 = vpop.permute.xlu1 %593 }
  0xe0   : > { %v600_v12 = vmul.f32 %v594_v59, %v987_v16  ;;  %v601_v13 = vmul.f32 %v594_v59, %v989_v17  ;;  %v676_v17 = vpop.permute.xlu0 %675 }
  0xe1   : > { %568 = vrot.lane.b32.xlu1 %v553_v0, %s859_s4  ;;  %566 = vrot.lane.b32.xlu0 %v552_v63, %s859_s4  ;;  %v686_v25 = vmul.f32 %v676_v17, %v1027_v44  ;;  %v687_v26 = vmul.f32 %v676_v17, %v1030_v46 }
  0xe4   : > { %v635_v18 = vpop.permute.xlu1 %634 }
  0xe5   : > { %572 = vrot.lane.b32.xlu1 %v555_v4, %s859_s4  ;;  %570 = vrot.lane.b32.xlu0 %v554_v3, %s859_s4  ;;  %v643_v20 = vmul.f32 %v635_v18, %v1006_v32  ;;  %v644_v22 = vmul.f32 %v635_v18, %v1009_v33 }
  0xe8   : > { %v639_v16 = vpop.permute.xlu1 %638 }
  0xe9   : > { %610 = vrot.lane.b32.xlu1 %v597_v6, %s859_s4  ;;  %608 = vrot.lane.b32.xlu0 %v596_v5, %s859_s4  ;;  %v645_v23 = vmul.f32 %v639_v16, %v1006_v32  ;;  %v646_v24 = vmul.f32 %v639_v16, %v1009_v33 }
  0xed   : > { %614 = vrot.lane.b32.xlu1 %v599_v10, %s859_s4  ;;  %612 = vrot.lane.b32.xlu0 %v598_v9, %s859_s4  ;;  %v680_v27 = vpop.permute.xlu1 %679 }
  0xee   : > { %v688_v28 = vmul.f32 %v680_v27, %v1027_v44  ;;  %v689_v29 = vmul.f32 %v680_v27, %v1030_v46 }
  0xf1   : > { %618 = vrot.lane.b32.xlu1 %v601_v13, %s859_s4  ;;  %616 = vrot.lane.b32.xlu0 %v600_v12, %s859_s4  ;;  %v684_v30 = vpop.permute.xlu1 %683 }
  0xf2   : > { %v690_v31 = vmul.f32 %v684_v30, %v1027_v44  ;;  %v691_v32 = vmul.f32 %v684_v30, %v1030_v46 }
  0xf5   : > { %655 = vrot.lane.b32.xlu1 %v642_v15, %s859_s4  ;;  %653 = vrot.lane.b32.xlu0 %v641_v14, %s859_s4 }
  0xf9   : > { %659 = vrot.lane.b32.xlu1 %v644_v22, %s859_s4  ;;  %657 = vrot.lane.b32.xlu0 %v643_v20, %s859_s4 }
  0xfd   : > { %663 = vrot.lane.b32.xlu1 %v646_v24, %s859_s4  ;;  %661 = vrot.lane.b32.xlu0 %v645_v23, %s859_s4 }
 0x101   : > { %700 = vrot.lane.b32.xlu1 %v687_v26, %s859_s4  ;;  %698 = vrot.lane.b32.xlu0 %v686_v25, %s859_s4 }
 0x105   : > { %704 = vrot.lane.b32.xlu1 %v689_v29, %s859_s4  ;;  %702 = vrot.lane.b32.xlu0 %v688_v28, %s859_s4 }
 0x109   : > { %708 = vrot.lane.b32.xlu1 %v691_v32, %s859_s4  ;;  %706 = vrot.lane.b32.xlu0 %v690_v31, %s859_s4 }
 0x117   : > { %v330_v33 = vpop.permute.xlu1 %329  ;;  %v328_v34 = vpop.permute.xlu0 %327 }
 0x118   : > { %v340_v35 = vsel %vm339_vm0, %v328_v34, %v330_v33 }
 0x119   : > { %v346_v36 = vadd.f32 %v340_v35, %v971_v62 }
 0x123   : > { %v334_v38 = vpop.permute.xlu1 %333  ;;  %v332_v39 = vpop.permute.xlu0 %331 }
 0x124   : > { %v341_v37 = vsel %vm339_vm0, %v332_v39, %v334_v38 }
 0x125   : > { %v347_v40 = vadd.f32 %v341_v37, %v978_v7 }
 0x127   : > { %v338_v41 = vpop.permute.xlu1 %337  ;;  %v336_v42 = vpop.permute.xlu0 %335 }
 0x128   : > { %v342_v43 = vsel %vm339_vm0, %v336_v42, %v338_v41 }
 0x129   : > { %v348_v19 = vadd.f32 %v342_v43, %v982_v11 }
 0x12b   : > { %v394_v44 = vpop.permute.xlu1 %393  ;;  %v392_v46 = vpop.permute.xlu0 %391 }
 0x12c   : > { %v403_v10 = vsel %vm339_vm0, %v392_v46, %v394_v44 }
 0x12d   : > { %v409_v13 = vadd.f32 %v403_v10, %v346_v36 }
 0x12f   : > { %v398_v21 = vpop.permute.xlu1 %397  ;;  %v396_v47 = vpop.permute.xlu0 %395 }
 0x130   : > { %v404_v14 = vsel %vm339_vm0, %v396_v47, %v398_v21 }
 0x131   : > { %v410_v23 = vadd.f32 %v404_v14, %v347_v40 }
 0x133   : > { %v402_v48 = vpop.permute.xlu1 %401  ;;  %v400_v49 = vpop.permute.xlu0 %399 }
 0x134   : > { %v405_v25 = vsel %vm339_vm0, %v400_v49, %v402_v48 }
 0x135   : > { %v411_v35 = vadd.f32 %v405_v25, %v348_v19 }
 0x137   : > { %v457_v50 = vpop.permute.xlu1 %456  ;;  %v455_v62 = vpop.permute.xlu0 %454 }
 0x138   : > { %v466_v12 = vsel %vm339_vm0, %v455_v62, %v457_v50 }
 0x139   : > { %v472_v18 = vadd.f32 %v466_v12, %v409_v13 }
 0x13b   : > { %v461_v51 = vpop.permute.xlu1 %460  ;;  %v459_v45 = vpop.permute.xlu0 %458 }
 0x13c   : > { %v467_v16 = vsel %vm339_vm0, %v459_v45, %v461_v51 }
 0x13d   : > { %v473_v28 = vadd.f32 %v467_v16, %v410_v23 }
 0x13f   : > { %v465_v52 = vpop.permute.xlu1 %464  ;;  %v463_v53 = vpop.permute.xlu0 %462 }
 0x140   : > { %v468_v32 = vsel %vm339_vm0, %v463_v53, %v465_v52 }
 0x141   : > { %v474_v40 = vadd.f32 %v468_v32, %v411_v35 }
 0x143   : > { %v520_v54 = vpop.permute.xlu1 %519  ;;  %v518_v7 = vpop.permute.xlu0 %517 }
 0x144   : > { %v529_v15 = vsel %vm339_vm0, %v518_v7, %v520_v54 }
 0x145   : > { %v535_v24 = vadd.f32 %v529_v15, %v472_v18 }
 0x147   : > { %v524_v55 = vpop.permute.xlu1 %523  ;;  %v522_v56 = vpop.permute.xlu0 %521 }
 0x148   : > { %v530_v26 = vsel %vm339_vm0, %v522_v56, %v524_v55 }
 0x149   : > { %v536_v36 = vadd.f32 %v530_v26, %v473_v28 }
 0x14b   : > { %v528_v57 = vpop.permute.xlu1 %527  ;;  %v526_v58 = vpop.permute.xlu0 %525 }
 0x14c   : > { %v531_v39 = vsel %vm339_vm0, %v526_v58, %v528_v57 }
 0x14d   : > { %v537_v48 = vadd.f32 %v531_v39, %v474_v40 }
 0x14f   : > { %v565_v61 = vpop.permute.xlu1 %564  ;;  %v563_v11 = vpop.permute.xlu0 %562 }
 0x150   : > { %v575_v17 = vsel %vm574_vm1, %v563_v11, %v565_v61 }
 0x151   : > { %v581_v29 = vadd.f32 %v575_v17, %v535_v24 }
 0x153   : > { %v569_v63 = vpop.permute.xlu1 %568  ;;  %v567_v0 = vpop.permute.xlu0 %566 }
 0x154   : > { %v576_v33 = vsel %vm574_vm1, %v567_v0, %v569_v63 }
 0x155   : > { %v582_v41 = vadd.f32 %v576_v33, %v536_v36 }
 0x157   : > { %v573_v1 = vpop.permute.xlu1 %572  ;;  %v571_v2 = vpop.permute.xlu0 %570 }
 0x158   : > { %v577_v46 = vsel %vm574_vm1, %v571_v2, %v573_v1 }
 0x159   : > { %v583_v62 = vadd.f32 %v577_v46, %v537_v48 }
 0x15b   : > { %v611_v3 = vpop.permute.xlu1 %610  ;;  %v609_v4 = vpop.permute.xlu0 %608 }
 0x15c   : > { %v620_v27 = vsel %vm574_vm1, %v609_v4, %v611_v3 }
 0x15d   : > { %v626_v38 = vadd.f32 %v620_v27, %v581_v29 }
 0x15f   : > { %v615_v5 = vpop.permute.xlu1 %614  ;;  %v613_v6 = vpop.permute.xlu0 %612 }
 0x160   : > { %v621_v37 = vsel %vm574_vm1, %v613_v6, %v615_v5 }
 0x161   : > { %v627_v19 = vadd.f32 %v621_v37, %v582_v41 }
 0x163   : > { %v619_v8 = vpop.permute.xlu1 %618  ;;  %v617_v9 = vpop.permute.xlu0 %616 }
 0x164   : > { %v622_v50 = vsel %vm574_vm1, %v617_v9, %v619_v8 }
 0x165   : > { %v628_v55 = vadd.f32 %v622_v50, %v583_v62 }
 0x167   : > { %v656_v59 = vpop.permute.xlu1 %655  ;;  %v654_v60 = vpop.permute.xlu0 %653 }
 0x168   : > { %v665_v34 = vsel %vm574_vm1, %v654_v60, %v656_v59 }
 0x169   : > { %v671_v42 = vadd.f32 %v665_v34, %v626_v38 }
 0x16b   : > { %v660_v20 = vpop.permute.xlu1 %659  ;;  %v658_v22 = vpop.permute.xlu0 %657 }
 0x16c   : > { %v666_v21 = vsel %vm574_vm1, %v658_v22, %v660_v20 }
 0x16d   : > { %v672_v51 = vadd.f32 %v666_v21, %v627_v19 }
 0x16f   : > { %v664_v30 = vpop.permute.xlu1 %663  ;;  %v662_v31 = vpop.permute.xlu0 %661 }
 0x170   : > { %v667_v54 = vsel %vm574_vm1, %v662_v31, %v664_v30 }
 0x171   : > { %v673_v57 = vadd.f32 %v667_v54, %v628_v55 }
 0x173   : > { %v701_v43 = vpop.permute.xlu1 %700  ;;  %v699_v44 = vpop.permute.xlu0 %698 }
 0x174   : > { %v710_v47 = vsel %vm574_vm1, %v699_v44, %v701_v43 }
 0x175   : > { %v716_v49 = vadd.f32 %v710_v47, %v671_v42 }
 0x177   : > { %v719_v45 = vmax.f32 %v716_v49, 0.0  ;;  %v705_v52 = vpop.permute.xlu1 %704  ;;  %v703_v53 = vpop.permute.xlu0 %702 }
 0x178   : > { %v711_v7 = vsel %vm574_vm1, %v703_v53, %v705_v52 }
 0x179   : > { %722 = vst [vmem:[%s170_s8] sm:$0xff] %v719_v45  ;;  %v717_v56 = vadd.f32 %v711_v7, %v672_v51 }
 0x17b   : > { %v720_v58 = vmax.f32 %v717_v56, 0.0  ;;  %v709_v61 = vpop.permute.xlu1 %708  ;;  %v707_v11 = vpop.permute.xlu0 %706 }
 0x17c   : > { %v712_v63 = vsel %vm574_vm1, %v707_v11, %v709_v61 }
 0x17d   : > { %723 = vst [vmem:[%s170_s8 + $0x8] sm:$0xff] %v720_v58  ;;  %v718_v0 = vadd.f32 %v712_v63, %v673_v57 }
 0x17f   : > { %v721_v1 = vmax.f32 %v718_v0, 0.0 }
 0x181   : > { %724 = vst [vmem:[%s170_s8 + $0x10] sm:$0xf] %v721_v1 }
 0x182 PF: > { %s13_s12 = sadd.s32 1, %s844_s12  }
 0x183   : > { %p10_p4 = scmp.ge.s32.totalorder %s13_s12, 4  }
 0x185   :  { %12 = sbr.rel (!%p10_p4) target bundleno = 1 (0x1), region = 62 }

</bundles_post_ra>
